<compile_context>
chip_gen: v6e
topology: v6e:2x2x1
jax: 0.10.0
libtpu: 0.0.40
codegen_flags: <defaults>
</compile_context>

<pallas_src>
import functools
import math

import jax
import jax.numpy as jnp
from jax.experimental import pallas as pl
from jax.experimental.pallas import tpu as pltpu


# ----------------------------------------------------------------------------
# Kernel 1: PositionalEncoding  (out = dropout(scale * X + P))
# ----------------------------------------------------------------------------

_TILE_BUDGET_BYTES = 12 * 1024 * 1024   # per-operand pipelined tile budget (safe on v5e/v6e/v7x)
_VMEM_LIMIT_BYTES = 32 * 1024 * 1024


def _uint32_keep_threshold(keep_prob: float):
    """keep iff bits < round(keep_prob * 2^32)  (exact to 2^-32, no float math)."""
    thr = min(int(round(keep_prob * 4294967296.0)), 4294967295)
    return jnp.asarray(thr, dtype=jnp.uint32)


def _pe_kernel(x_ref, p_ref, *rest, scale: float, rate: float):
    """Fused y = dropout(scale * x + P) on lane-dense (rows, T*H) tiles."""
    if rate > 0.0:
        bits_ref, o_ref = rest
    else:
        (o_ref,) = rest

    x = x_ref[...]
    if scale != 1.0:
        x = x * scale                       # weak-typed python float: stays in x.dtype
    y = x + p_ref[...]                      # (1, T*H) sublane-broadcasts over rows

    if rate > 0.0:                          # compile-time branch (training mode)
        keep_prob = 1.0 - rate
        keep = bits_ref[...] < _uint32_keep_threshold(keep_prob)   # integer compare only
        y = jnp.where(keep, y * (1.0 / keep_prob), jnp.zeros_like(y))

    o_ref[...] = y.astype(o_ref.dtype)


def make_positional_table(num_hiddens: int, max_len: int = 1000,
                          dtype=jnp.float32) -> jax.Array:
    """Deterministic parameter setup mirroring PositionalEncoding.__init__."""
    pos = jnp.arange(max_len, dtype=jnp.float32).reshape(-1, 1)
    div = jnp.power(
        10000.0,
        jnp.arange(0, num_hiddens, 2, dtype=jnp.float32) / num_hiddens)
    X = pos / div                                   # (max_len, H/2)
    P = jnp.zeros((1, max_len, num_hiddens), dtype)
    P = P.at[:, :, 0::2].set(jnp.sin(X).astype(dtype))
    P = P.at[:, :, 1::2].set(jnp.cos(X).astype(dtype))
    return P


def prepare_positional_table(P: jax.Array, seq_len: int, dtype) -> jax.Array:
    """Hoisted once-per-shape prep: slice to seq_len, cast, flatten lane-dense."""
    _, max_len, H = P.shape
    assert seq_len <= max_len
    return P[:, :seq_len, :].astype(dtype).reshape(1, seq_len * H)


def _choose_batch_tile(batch: int, row_elems: int, itemsize: int, with_bits: bool) -> int:
    """Largest batch-row tile whose double-buffered in/out(+bits) fit the budget."""
    per_row = 2 * row_elems * (2 * itemsize + (4 if with_bits else 0))
    tile = max(1, _TILE_BUDGET_BYTES // max(per_row, 1))
    if tile >= batch:
        return batch                                 # one full-batch block
    return max(8, (tile // 8) * 8)                   # keep sublane dim 8-aligned


def positional_encoding_forward(x: jax.Array, p_flat: jax.Array, *,
                                scale: float = 1.0,
                                dropout: float = 0.0,
                                training: bool = False,
                                rng_key=None) -> jax.Array:
    """x: (B, T, H); p_flat: (1, T*H) from prepare_positional_table. Returns (B, T, H)."""
    B, T, H = x.shape
    N = T * H
    assert p_flat.shape == (1, N), (p_flat.shape, (1, N))
    rate = float(dropout) if training else 0.0
    if rate > 0.0 and rng_key is None:
        rng_key = jax.random.PRNGKey(0)

    x2 = x.reshape(B, N)                             # lane-dense flat layout
    bt = _choose_batch_tile(B, N, x.dtype.itemsize, rate > 0.0)
    grid = (pl.cdiv(B, bt),)

    row_spec = pl.BlockSpec((bt, N), lambda i: (i, 0))
    in_specs = [row_spec, pl.BlockSpec((1, N), lambda i: (0, 0))]
    args = [x2, p_flat]
    if rate > 0.0:
        bits = jax.random.bits(rng_key, (B, N), dtype=jnp.uint32)
        in_specs.append(pl.BlockSpec((bt, N), lambda i: (i, 0)))
        args.append(bits)

    kernel = functools.partial(_pe_kernel, scale=float(scale), rate=rate)
    out2 = pl.pallas_call(
        kernel,
        out_shape=jax.ShapeDtypeStruct((B, N), x.dtype),
        grid=grid,
        in_specs=in_specs,
        out_specs=pl.BlockSpec((bt, N), lambda i: (i, 0)),
        compiler_params=pltpu.CompilerParams(
            dimension_semantics=("parallel",),       # independent rows -> both v7x TCs
            vmem_limit_bytes=_VMEM_LIMIT_BYTES),
    )(*args)
    return out2.reshape(B, T, H)


# ----------------------------------------------------------------------------
# Kernel 2: GIT2 classifier head (mean-pool + MLP).  The num_layers
# d2l.EncoderBlock transformer blocks that sit between kernel 1 and kernel 2 in
# GIT2.forward are NOT translated here.
# TODO(synk): d2l.EncoderBlock is an external dependency not provided in the spec.
# ----------------------------------------------------------------------------

def _git2_head_kernel(x_ref, w1_ref, b1_ref, w2_ref, b2_ref, *rest, rate: float):
    """preds = W2(drop(relu(W1(drop(relu(mean(X, 1))))))) for a full (B,T,E) block."""
    if rate > 0.0:
        bits1_ref, bits2_ref, o_ref = rest
    else:
        (o_ref,) = rest

    x = x_ref[...].astype(jnp.float32)
    emb = jnp.mean(x, axis=1)                        # (B, E): reduce over seq (sublanes)
    h = jnp.maximum(emb, 0.0)                        # relu

    if rate > 0.0:
        keep_prob = 1.0 - rate
        thr = _uint32_keep_threshold(keep_prob)
        inv_keep = 1.0 / keep_prob
        h = jnp.where(bits1_ref[...] < thr, h * inv_keep, 0.0)

    hid = jnp.dot(h, w1_ref[...].astype(jnp.float32),
                  preferred_element_type=jnp.float32) + b1_ref[...].astype(jnp.float32)
    hid = jnp.maximum(hid, 0.0)
    if rate > 0.0:
        hid = jnp.where(bits2_ref[...] < thr, hid * inv_keep, 0.0)

    preds = jnp.dot(hid, w2_ref[...].astype(jnp.float32),
                    preferred_element_type=jnp.float32) + b2_ref[...].astype(jnp.float32)
    o_ref[...] = preds.astype(o_ref.dtype)


def git2_head_forward(x, w1, b1, w2, b2, *, dropout: float = 0.0,
                      training: bool = False, rng_key=None) -> jax.Array:
    """x: (B, T, E). Returns (B, num_classes). Whole arrays fit VMEM (head is tiny)."""
    B, T, E = x.shape
    hidden = w1.shape[1]
    num_classes = w2.shape[1]
    rate = float(dropout) if training else 0.0
    if rate > 0.0 and rng_key is None:
        rng_key = jax.random.PRNGKey(0)

    args = [x, w1, b1.reshape(1, hidden), w2, b2.reshape(1, num_classes)]
    if rate > 0.0:
        k1, k2 = jax.random.split(rng_key)
        args.append(jax.random.bits(k1, (B, E), dtype=jnp.uint32))
        args.append(jax.random.bits(k2, (B, hidden), dtype=jnp.uint32))

    kernel = functools.partial(_git2_head_kernel, rate=rate)
    # num_classes < 128 -> masked store on the tiny (B, C) output; negligible here.
    return pl.pallas_call(
        kernel,
        out_shape=jax.ShapeDtypeStruct((B, num_classes), x.dtype),
    )(*args)


# ----------------------------------------------------------------------------
# Demo / self-check
# ----------------------------------------------------------------------------

if __name__ == "__main__":
    # Small shapes consistent with GIT2: batch=2, seq=8, embedding_size=32,
    # hidden_size=64, num_classes=10.
    B, T, H = 2, 8, 32
    HIDDEN, NUM_CLASSES = 64, 10
    max_len = 1000
    dropout_p = 0.1
    scale = math.sqrt(H)                  # GIT2: X * sqrt(embedding_size)

    key = jax.random.PRNGKey(0)
    kx, kw1, kb1, kw2, kb2, kd0, kd1 = jax.random.split(key, 7)
    x = jax.random.normal(kx, (B, T, H), dtype=jnp.float32)

    P = make_positional_table(H, max_len=max_len)
    p_flat = prepare_positional_table(P, T, x.dtype)       # hoisted once per shape

    # --- positional encoding, eval mode: exact check vs scale*x + P[:, :T, :] ---
    out_eval = positional_encoding_forward(x, p_flat, scale=scale,
                                           dropout=dropout_p, training=False)
    out_eval = jax.block_until_ready(out_eval)
    ref = x * scale + P[:, :T, :]
    assert out_eval.shape == (B, T, H)
    assert jnp.allclose(out_eval, ref, atol=1e-5, rtol=1e-5), "mismatch vs ref"

    # --- positional encoding, training mode: dropout outputs are {0, ref/keep} ---
    out_train = positional_encoding_forward(x, p_flat, scale=scale,
                                            dropout=dropout_p, training=True,
                                            rng_key=kd0)
    out_train = jax.block_until_ready(out_train)
    keep_prob = 1.0 - dropout_p
    ok = jnp.logical_or(jnp.isclose(out_train, 0.0, atol=1e-6),
                        jnp.isclose(out_train, ref / keep_prob, atol=1e-4, rtol=1e-4))
    assert bool(jnp.all(ok)), "dropout output is not {0, ref/keep_prob}"

    # --- GIT2 classifier head on the PE output (encoder blocks skipped, see TODO) ---
    w1 = jax.random.normal(kw1, (H, HIDDEN), dtype=jnp.float32) * 0.1
    b1 = jax.random.normal(kb1, (HIDDEN,), dtype=jnp.float32) * 0.1
    w2 = jax.random.normal(kw2, (HIDDEN, NUM_CLASSES), dtype=jnp.float32) * 0.1
    b2 = jax.random.normal(kb2, (NUM_CLASSES,), dtype=jnp.float32) * 0.1

    preds = git2_head_forward(out_eval, w1, b1, w2, b2,
                              dropout=dropout_p, training=False)
    preds = jax.block_until_ready(preds)
    emb = jnp.maximum(jnp.mean(out_eval, axis=1), 0.0)
    hid = jnp.maximum(emb @ w1 + b1, 0.0)
    ref_preds = hid @ w2 + b2
    assert preds.shape == (B, NUM_CLASSES)
    assert jnp.allclose(preds, ref_preds, atol=1e-2, rtol=1e-2), "head mismatch vs ref"

    # Training-mode head just to exercise the dropout path.
    preds_train = git2_head_forward(out_eval, w1, b1, w2, b2,
                                    dropout=dropout_p, training=True, rng_key=kd1)
    preds_train = jax.block_until_ready(preds_train)
    assert preds_train.shape == (B, NUM_CLASSES)

    print("KERNEL_OK")
</pallas_src>

<mosaic_0001>
module attributes {stable_mosaic.version = 11 : i64} {
  func.func @_pe_kernel(%arg0: i32, %arg1: memref<2x256xf32, #tpu.memory_space<vmem>>, %arg2: memref<1x256xf32, #tpu.memory_space<vmem>>, %arg3: memref<2x256xf32, #tpu.memory_space<vmem>>) attributes {dimension_semantics = [#tpu.dimension_semantics<parallel>], iteration_bounds = array<i64: 1>, scalar_prefetch = 0 : i64, scratch_operands = 0 : i64, tpu.core_type = #tpu.core_type<tc>, window_params = [{transform_indices = @transform_0, window_bounds = array<i64: 2, 256>}, {pipeline_mode = #tpu.pipeline_mode<synchronous>, transform_indices = @transform_1, window_bounds = array<i64: 1, 256>}, {transform_indices = @transform_2, window_bounds = array<i64: 2, 256>}]} {
    %c0 = arith.constant 0 : index
    %c0_0 = arith.constant 0 : index
    %0 = vector.load %arg1[%c0, %c0_0] : memref<2x256xf32, #tpu.memory_space<vmem>>, vector<2x256xf32>
    %cst = arith.constant 5.65685415 : f32
    %1 = vector.broadcast %cst : f32 to vector<2x256xf32>
    %2 = arith.mulf %0, %1 : vector<2x256xf32>
    %c0_1 = arith.constant 0 : index
    %c0_2 = arith.constant 0 : index
    %3 = vector.load %arg2[%c0_1, %c0_2] : memref<1x256xf32, #tpu.memory_space<vmem>>, vector<1x256xf32>
    %4 = vector.broadcast %3 : vector<1x256xf32> to vector<2x256xf32>
    %5 = arith.addf %2, %4 : vector<2x256xf32>
    %c0_3 = arith.constant 0 : index
    %c0_4 = arith.constant 0 : index
    %6 = vector.load %arg3[%c0_3, %c0_4] : memref<2x256xf32, #tpu.memory_space<vmem>>, vector<2x256xf32>
    tpu.vector_store %arg3[%c0_3, %c0_4], %5 {strides = array<i32>} : memref<2x256xf32, #tpu.memory_space<vmem>>, vector<2x256xf32>,
    return
  }
  func.func @transform_0(%arg0: i32) -> (i32, i32) {
    %c0_i32 = arith.constant 0 : i32
    %c0_i32_0 = arith.constant 0 : i32
    return %arg0, %c0_i32 : i32, i32
  }
  func.func @transform_1(%arg0: i32) -> (i32, i32) {
    %c0_i32 = arith.constant 0 : i32
    %c0_i32_0 = arith.constant 0 : i32
    %c0_i32_1 = arith.constant 0 : i32
    return %c0_i32, %c0_i32_0 : i32, i32
  }
  func.func @transform_2(%arg0: i32) -> (i32, i32) {
    %c0_i32 = arith.constant 0 : i32
    %c0_i32_0 = arith.constant 0 : i32
    return %arg0, %c0_i32 : i32, i32
  }
}

</mosaic_0001>

<bundles_post_ra>
// kernel: tpu_custom_call.1
= control target key start
LH: loop header
LB: loop body
LE: loop exit
PB: predicated region body
PF: predicated region fallthrough
CT: control target
= control target key end

     0   :  { %7 = vsyncpa [#allocation3], 0  ;;  %s173_s0 = inlined_call_operand.hbm [shape: f32[2,256], index: 0, kind: input, shape index: {}]   ;;  %s174_s1 = inlined_call_operand.hbm [shape: f32[1,256], index: 1, kind: input, shape index: {}]   ;;  %s175_s2 = inlined_call_operand.hbm [shape: f32[2,256], index: 2, kind: output, shape index: {}]  }
   0x1   :  { %8 = vsyncpa [#allocation6], 0 }
   0x2   :  { %9 = vsyncpa [#allocation4], 0  ;;  %s145_s9 = smov [#allocation2]   ;;  %s146_s11 = smov [#allocation5]  }
   0x3   :  { %s16_s10 = sshll.u32 %s145_s9, 4  ;;  %s26_s12 = sshll.u32 %s146_s11, 4  ;;  %s17_s10 = int_to_ptr.vmem [resolvable:$true] %s16_s10  ;;  %s27_s12 = int_to_ptr.vmem [resolvable:$true] %s26_s12 }
   0x4   :  { %s87_s13 = scalar_lea.vmem %s17_s10, 64  ;;  %p92_p1 = scmp.lt.s32.totalorder %s17_s10, %s17_s10 }
   0x5   :  { %p88_p0 = scmp.ne.s32.totalorder %s17_s10, %s87_s13  ;;  %p93_p2 = scmp.lt.s32.totalorder %s87_s13, %s87_s13 }
   0x7   :  { %p94_p3 = por %p93_p2, %p92_p1 }
   0x9   :  { %p95_p4 = pnand %p94_p3, %p88_p0 }
   0xb   :  { %98 = shalt.err (!%p95_p4)
}
   0xc   :  { %19 = dma.hbm_to_vmem [thread:$0]  %s173_s0, 64, %s17_s10, [#allocation3]  }
   0xd   :  { %s107_s16 = scalar_lea.vmem %s27_s12, 32  ;;  %p112_p6 = scmp.lt.s32.totalorder %s27_s12, %s27_s12 }
   0xe   :  { %p108_p5 = scmp.ne.s32.totalorder %s27_s12, %s107_s16  ;;  %p113_p7 = scmp.lt.s32.totalorder %s107_s16, %s107_s16 }
  0x10   :  { %p114_p8 = por %p113_p7, %p112_p6 }
  0x12   :  { %p115_p9 = pnand %p114_p8, %p108_p5 }
  0x14   :  { %118 = shalt.err (!%p115_p9)
}
  0x15   :  { %29 = dma.hbm_to_vmem [thread:$0]  %s174_s1, 32, %s27_s12, [#allocation6]  }
  0x16   :  { %139 = dma.done.wait [#allocation3], 64  }
  0x17   :  { %140 = vsyncadd [#allocation3], 4294967232 }
  0x18   :  { %141 = dma.done.wait [#allocation6], 32  }
  0x19   :  { %142 = vsyncadd [#allocation6], 4294967264  ;;  %v40_v0 = vlaneseq  ;;  %v147_v1 = vmov 1983009808   ;;  %v36_v7 = vld [vmem:[#allocation2] sm:$0xf] }
  0x1a   :  { %v50_v2 = vunpack.c.l.s4 %v147_v1  ;;  %v38_v8 = vld [vmem:[#allocation5] sm:$0x3]  ;;  %v37_v12 = vmul.f32 5.656854, %v36_v7  ;;  %s148_s0 = smov [#allocation7]  }
  0x1b   :  { %v41_v3 = vshrl.u32 %v40_v0, 7  ;;  %s65_s1 = sshll.u32 %s148_s0, 4  ;;  %s66_s1 = int_to_ptr.vmem [resolvable:$true] %s65_s1 }
  0x1c   :  { %v51_v6 = vunpack.c.0.s8 %v50_v2  ;;  %s119_s19 = scalar_lea.vmem %s66_s1, 64  ;;  %p124_p11 = scmp.lt.s32.totalorder %s66_s1, %s66_s1 }
  0x1d   :  { %v42_v4 = vsub.s32 0, %v41_v3  ;;  %v46_v5 = vsub.s32 1, %v41_v3  ;;  %p120_p10 = scmp.ne.s32.totalorder %s66_s1, %s119_s19  ;;  %p125_p12 = scmp.lt.s32.totalorder %s119_s19, %s119_s19 }
  0x1e   :  { %v54_v11 = vsub.s32 %v51_v6, %v41_v3 }
  0x1f   :  { %v43_v9 = vrot.slane %v38_v8, %v42_v4  ;;  %v47_v10 = vrot.slane %v38_v8, %v46_v5  ;;  %p126_p13 = por %p125_p12, %p124_p11 }
  0x21   :  { %v48_v13 = vcombine.low %v43_v9, %v47_v10  ;;  %p127_p0 = pnand %p126_p13, %p120_p10 }
  0x23   :  { %v55_v14 = vrot.slane %v48_v13, %v54_v11 }
  0x25   :  { %v57_v15 = vadd.f32 %v55_v14, %v37_v12 }
  0x27   :  { %58 = vst [vmem:[#allocation7] sm:$0xf] %v57_v15 }
  0x28   :  { %130 = shalt.err (!%p127_p0)
}
  0x29   :  { %68 = dma.vmem_to_hbm [thread:$0]  %s66_s1, 64, %s175_s2, [#allocation4]  }
  0x2a   :  { %143 = dma.done.wait [#allocation4], 64  }
  0x2b   :  { %144 = vsyncadd [#allocation4], 4294967232 }
  0x2c   :  { %72 = vsyncpa [#allocation3], 1 }
  0x2d   :  { %73 = vsyncpa [#allocation6], 1 }
  0x2e   :  { %74 = vsyncpa [#allocation4], 1 }

</bundles_post_ra>
